<compile_context>
chip_gen: v7x
topology: tpu7x:2x2x1
jax: 0.10.0
libtpu: 0.0.40
codegen_flags: <defaults>
</compile_context>

<pallas_src>
import functools

import jax
import jax.numpy as jnp
from jax.experimental import pallas as pl
from jax.experimental.pallas import tpu as pltpu

LN_EPS = 1e-5


def _round_up(x, m):
    return ((x + m - 1) // m) * m


def _vmem_capacity_bytes():
    try:
        return int(pltpu.get_tpu_info().vmem_capacity_bytes)
    except Exception:
        return 64 * 1024 * 1024  # conservative (v7x per-TC VMEM)


def ffn_kernel(x_ref, w1_ref, w2_ref, o_ref, acc_ref, *, matmul_dtype):
    """One (row-tile, d_ff-block) step of LN(relu(x@W1)@W2 + x)."""
    k = pl.program_id(1)

    @pl.when(k == 0)
    def _init():
        acc_ref[...] = jnp.zeros_like(acc_ref)

    # MXU feeds in matmul_dtype (bf16 for f32 activations), f32 accumulation.
    x = x_ref[...]
    xm = x.astype(matmul_dtype)
    h = jnp.dot(xm, w1_ref[...], preferred_element_type=jnp.float32)
    h = jnp.maximum(h, 0.0).astype(matmul_dtype)          # ReLU + narrow feed
    acc_ref[...] += jnp.dot(h, w2_ref[...], preferred_element_type=jnp.float32)

    @pl.when(k == pl.num_programs(1) - 1)
    def _finalize():
        # residual + LayerNorm (gamma=1, beta=0, biased variance, eps=1e-5).
        # Two-pass mean/var in f32 for numerical stability.
        y = acc_ref[...] + x.astype(jnp.float32)
        mean = jnp.mean(y, axis=-1, keepdims=True)
        yc = y - mean
        var = jnp.mean(yc * yc, axis=-1, keepdims=True)
        o_ref[...] = (yc * jax.lax.rsqrt(var + LN_EPS)).astype(o_ref.dtype)


def poswise_ffn(x, w1, w2, *, matmul_dtype=None, tm_max=512):
    """x: [batch, seq, d_model]; w1: [d_model, d_ff]; w2: [d_ff, d_model]."""
    b, s, d_model = x.shape
    d_ff = w1.shape[1]
    rows = b * s

    # bf16 MXU path by default for f32 activations (f32 accumulation kept).
    if matmul_dtype is None:
        matmul_dtype = jnp.bfloat16 if x.dtype == jnp.float32 else x.dtype
    matmul_dtype = jnp.dtype(matmul_dtype)

    w1 = w1.astype(matmul_dtype)
    w2 = w2.astype(matmul_dtype)

    x_item = jnp.dtype(x.dtype).itemsize
    out_item = x_item
    w_item = matmul_dtype.itemsize

    vmem_cap = _vmem_capacity_bytes()
    vmem_budget = int(vmem_cap * 0.70)      # leave headroom for compiler scratch
    weight_budget = int(vmem_cap * 0.45)

    # ---- row tile ---------------------------------------------------------
    sub = max(8, 32 // x_item)              # packed-sublane multiple (8/16/32)
    tm = min(tm_max, _round_up(rows, sub))
    # Keep >=2 row blocks when there is enough work (v7x: 2 TensorCores share
    # the "parallel" axis).
    if rows > 256 and pl.cdiv(rows, tm) < 2:
        tm = max(sub, _round_up(pl.cdiv(rows, 2), sub))

    # ---- d_ff block -------------------------------------------------------
    def weight_bytes(tk_):
        return 2 * 2 * d_model * tk_ * w_item            # w1+w2, double-buffered

    def total_bytes(tm_, tk_):
        act = 2 * tm_ * d_model * (x_item + out_item)    # x/out tiles, dbl-buf
        acc = tm_ * d_model * 4                          # f32 accumulator
        inter = tm_ * tk_ * (4 + w_item)                 # h (f32) + narrowed copy
        return weight_bytes(tk_) + act + acc + inter

    tk = d_ff
    d_ff_p = d_ff
    if total_bytes(tm, d_ff) > vmem_budget:
        # Block d_ff: prefer a 256-aligned divisor; never fall back to raw
        # d_ff -- pad the weights with zeros instead (zero columns/rows add 0).
        tk_cap = max(256, (weight_budget // (2 * 2 * d_model * w_item)) // 256 * 256)
        tk = None
        for cand in range(min(tk_cap, (d_ff // 256) * 256), 255, -256):
            if d_ff % cand == 0:
                tk = cand
                break
        if tk is None:
            for cand in range(min(tk_cap, (d_ff // 128) * 128), 127, -128):
                if d_ff % cand == 0:
                    tk = cand
                    break
        if tk is None:
            tk = min(tk_cap, _round_up(d_ff, 256))
        d_ff_p = _round_up(d_ff, tk)
        if d_ff_p != d_ff:
            w1 = jnp.pad(w1, ((0, 0), (0, d_ff_p - d_ff)))
            w2 = jnp.pad(w2, ((0, d_ff_p - d_ff), (0, 0)))
        # If the row tile is what blows the budget, shrink it.
        while total_bytes(tm, tk) > vmem_budget and tm > sub:
            tm = max(sub, _round_up(tm // 2, sub))

    num_row_blocks = pl.cdiv(rows, tm)
    num_k_blocks = d_ff_p // tk
    grid = (num_row_blocks, num_k_blocks)

    vmem_limit = max(32 * 1024 * 1024, int(total_bytes(tm, tk) * 1.5))
    vmem_limit = min(vmem_limit, int(vmem_cap * 0.85))

    # Optional triple-buffered weight pipeline on 128 MiB parts (v5e/v6e) in
    # the multi-k-block (streaming) regime.  Never on 64 MiB v7x.
    def _weight_spec(shape, index_map):
        extra = 2 * d_model * tk * w_item
        if (num_k_blocks > 1 and vmem_cap >= (100 << 20)
                and total_bytes(tm, tk) + extra < vmem_budget):
            try:
                return pl.BlockSpec(shape, index_map, pipeline_mode=pl.Buffered(3))
            except TypeError:
                pass
        return pl.BlockSpec(shape, index_map)

    x2d = x.reshape(rows, d_model)   # no host-side padding; ragged last row
                                     # block is masked on writeback

    weight_mult = 1 if num_k_blocks == 1 else num_row_blocks
    flops = 4 * rows * d_model * d_ff + 10 * rows * d_model
    bytes_accessed = (rows * d_model * (x_item + out_item)
                      + weight_mult * 2 * d_model * d_ff_p * w_item)

    kernel = functools.partial(ffn_kernel, matmul_dtype=matmul_dtype)

    out2d = pl.pallas_call(
        kernel,
        out_shape=jax.ShapeDtypeStruct((rows, d_model), x.dtype),
        grid_spec=pltpu.PrefetchScalarGridSpec(
            num_scalar_prefetch=0,
            grid=grid,
            in_specs=[
                pl.BlockSpec((tm, d_model), lambda i, k: (i, 0)),
                _weight_spec((d_model, tk), lambda i, k: (0, k)),
                _weight_spec((tk, d_model), lambda i, k: (k, 0)),
            ],
            out_specs=pl.BlockSpec((tm, d_model), lambda i, k: (i, 0)),
            scratch_shapes=[pltpu.VMEM((tm, d_model), jnp.float32)],
        ),
        compiler_params=pltpu.CompilerParams(
            dimension_semantics=("parallel", "arbitrary"),
            vmem_limit_bytes=vmem_limit,
        ),
        cost_estimate=pl.CostEstimate(
            flops=flops, transcendentals=rows, bytes_accessed=bytes_accessed),
    )(x2d, w1, w2)

    return out2d.reshape(b, s, d_model)


def reference_ffn(x, w1, w2):
    xf = x.astype(jnp.float32)
    y = jnp.maximum(xf @ w1.astype(jnp.float32), 0.0) @ w2.astype(jnp.float32) + xf
    mean = jnp.mean(y, axis=-1, keepdims=True)
    var = jnp.mean((y - mean) ** 2, axis=-1, keepdims=True)
    return ((y - mean) * jax.lax.rsqrt(var + LN_EPS)).astype(x.dtype)


if __name__ == "__main__":
    batch, seq, d_model, d_ff = 2, 8, 32, 64

    key = jax.random.PRNGKey(0)
    kx, k1, k2 = jax.random.split(key, 3)

    x = jax.random.normal(kx, (batch, seq, d_model), dtype=jnp.float32)

    # deterministic "kaiming-uniform-like" init matching nn.Linear(bias=False);
    # weights stored transposed for right-multiplication.
    bound1 = 1.0 / (d_model ** 0.5)
    bound2 = 1.0 / (d_ff ** 0.5)
    w1 = jax.random.uniform(k1, (d_model, d_ff), jnp.float32, -bound1, bound1)
    w2 = jax.random.uniform(k2, (d_ff, d_model), jnp.float32, -bound2, bound2)

    ref = reference_ffn(x, w1, w2)

    # Exact f32-MXU path: matches the f32 reference tightly.
    out_f32 = jax.block_until_ready(poswise_ffn(x, w1, w2, matmul_dtype=jnp.float32))
    assert out_f32.shape == (batch, seq, d_model)
    assert jnp.allclose(out_f32, ref, atol=1e-4, rtol=1e-4), "f32 path mismatch"

    # Default fast path (bf16 MXU feeds, f32 accumulation + f32 LN epilogue).
    out_fast = jax.block_until_ready(poswise_ffn(x, w1, w2))
    assert out_fast.shape == (batch, seq, d_model)
    assert jnp.allclose(out_fast, ref, atol=3e-2, rtol=3e-2), "bf16 path mismatch"

    print("KERNEL_OK")
</pallas_src>

<mosaic_0001>
module attributes {stable_mosaic.version = 11 : i64} {
  func.func @ffn_kernel(%arg0: i32, %arg1: i32, %arg2: memref<16x32xf32, #tpu.memory_space<vmem>>, %arg3: memref<32x64xf32, #tpu.memory_space<vmem>>, %arg4: memref<64x32xf32, #tpu.memory_space<vmem>>, %arg5: memref<16x32xf32, #tpu.memory_space<vmem>>, %arg6: memref<16x32xf32, #tpu.memory_space<vmem>>) attributes {dimension_semantics = [#tpu.dimension_semantics<parallel>, #tpu.dimension_semantics<arbitrary>], iteration_bounds = array<i64: 1, 1>, scalar_prefetch = 0 : i64, scratch_operands = 1 : i64, tpu.core_type = #tpu.core_type<tc>, window_params = [{transform_indices = @transform_0, window_bounds = array<i64: 16, 32>}, {transform_indices = @transform_1, window_bounds = array<i64: 32, 64>}, {transform_indices = @transform_2, window_bounds = array<i64: 64, 32>}, {transform_indices = @transform_3, window_bounds = array<i64: 16, 32>}]} {
    %c0_i32 = arith.constant 0 : i32
    %0 = arith.cmpi eq, %arg1, %c0_i32 : i32
    %1 = arith.extui %0 : i1 to i32
    %c0_i32_0 = arith.constant 0 : i32
    %2 = arith.cmpi ne, %1, %c0_i32_0 : i32
    scf.if %2 {
      %cst_14 = arith.constant 0.000000e+00 : f32
      %16 = vector.broadcast %cst_14 : f32 to vector<16x32xf32>
      %c0_15 = arith.constant 0 : index
      %c0_16 = arith.constant 0 : index
      %17 = vector.load %arg6[%c0_15, %c0_16] : memref<16x32xf32, #tpu.memory_space<vmem>>, vector<16x32xf32>
      tpu.vector_store %arg6[%c0_15, %c0_16], %16 {strides = array<i32>} : memref<16x32xf32, #tpu.memory_space<vmem>>, vector<16x32xf32>,
    } else {
    }
    %c0 = arith.constant 0 : index
    %c0_1 = arith.constant 0 : index
    %3 = vector.load %arg2[%c0, %c0_1] : memref<16x32xf32, #tpu.memory_space<vmem>>, vector<16x32xf32>
    %c0_2 = arith.constant 0 : index
    %c0_3 = arith.constant 0 : index
    %4 = vector.load %arg3[%c0_2, %c0_3] : memref<32x64xf32, #tpu.memory_space<vmem>>, vector<32x64xf32>
    %cst = arith.constant dense<0.000000e+00> : vector<16x64xf32>
    %5 = tpu.matmul %3, %4, %cst {dimension_numbers = #tpu.dot_dimension_numbers<[1], [0], [0], [1], [0, 0, 1, 1], [], []>} : vector<16x32xf32>, vector<32x64xf32>, vector<16x64xf32> -> vector<16x64xf32>
    %cst_4 = arith.constant 0.000000e+00 : f32
    %6 = vector.broadcast %cst_4 : f32 to vector<16x64xf32>
    %7 = arith.maximumf %5, %6 : vector<16x64xf32>
    %c0_5 = arith.constant 0 : index
    %c0_6 = arith.constant 0 : index
    %8 = vector.load %arg6[%c0_5, %c0_6] : memref<16x32xf32, #tpu.memory_space<vmem>>, vector<16x32xf32>
    %c0_7 = arith.constant 0 : index
    %c0_8 = arith.constant 0 : index
    %9 = vector.load %arg4[%c0_7, %c0_8] : memref<64x32xf32, #tpu.memory_space<vmem>>, vector<64x32xf32>
    %cst_9 = arith.constant dense<0.000000e+00> : vector<16x32xf32>
    %10 = tpu.matmul %7, %9, %cst_9 {dimension_numbers = #tpu.dot_dimension_numbers<[1], [0], [0], [1], [0, 0, 1, 1], [], []>} : vector<16x64xf32>, vector<64x32xf32>, vector<16x32xf32> -> vector<16x32xf32>
    %11 = arith.addf %8, %10 : vector<16x32xf32>
    %c0_10 = arith.constant 0 : index
    %c0_11 = arith.constant 0 : index
    %12 = vector.load %arg6[%c0_10, %c0_11] : memref<16x32xf32, #tpu.memory_space<vmem>>, vector<16x32xf32>
    tpu.vector_store %arg6[%c0_10, %c0_11], %11 {strides = array<i32>} : memref<16x32xf32, #tpu.memory_space<vmem>>, vector<16x32xf32>,
    %c0_i32_12 = arith.constant 0 : i32
    %13 = arith.cmpi eq, %arg1, %c0_i32_12 : i32
    %14 = arith.extui %13 : i1 to i32
    %c0_i32_13 = arith.constant 0 : i32
    %15 = arith.cmpi ne, %14, %c0_i32_13 : i32
    scf.if %15 {
      %c0_14 = arith.constant 0 : index
      %c0_15 = arith.constant 0 : index
      %16 = vector.load %arg6[%c0_14, %c0_15] : memref<16x32xf32, #tpu.memory_space<vmem>>, vector<16x32xf32>
      %17 = arith.addf %16, %3 : vector<16x32xf32>
      %cst_16 = arith.constant dense<0.000000e+00> : vector<16xf32>
      %18 = vector.multi_reduction <add>, %17, %cst_16 [1] : vector<16x32xf32> to vector<16xf32>
      %19 = vector.shape_cast %18 : vector<16xf32> to vector<16x1xf32>
      %cst_17 = arith.constant 3.200000e+01 : f32
      %20 = vector.broadcast %cst_17 : f32 to vector<16x1xf32>
      %21 = arith.divf %19, %20 : vector<16x1xf32>
      %22 = vector.broadcast %21 : vector<16x1xf32> to vector<16x32xf32>
      %23 = arith.subf %17, %22 : vector<16x32xf32>
      %24 = arith.mulf %23, %23 : vector<16x32xf32>
      %cst_18 = arith.constant dense<0.000000e+00> : vector<16xf32>
      %25 = vector.multi_reduction <add>, %24, %cst_18 [1] : vector<16x32xf32> to vector<16xf32>
      %26 = vector.shape_cast %25 : vector<16xf32> to vector<16x1xf32>
      %cst_19 = arith.constant 3.200000e+01 : f32
      %27 = vector.broadcast %cst_19 : f32 to vector<16x1xf32>
      %28 = arith.divf %26, %27 : vector<16x1xf32>
      %cst_20 = arith.constant 9.99999974E-6 : f32
      %29 = vector.broadcast %cst_20 : f32 to vector<16x1xf32>
      %30 = arith.addf %28, %29 : vector<16x1xf32>
      %31 = math.rsqrt %30 : vector<16x1xf32>
      %32 = vector.broadcast %31 : vector<16x1xf32> to vector<16x32xf32>
      %33 = arith.mulf %23, %32 : vector<16x32xf32>
      %c0_21 = arith.constant 0 : index
      %c0_22 = arith.constant 0 : index
      %34 = vector.load %arg5[%c0_21, %c0_22] : memref<16x32xf32, #tpu.memory_space<vmem>>, vector<16x32xf32>
      tpu.vector_store %arg5[%c0_21, %c0_22], %33 {strides = array<i32>} : memref<16x32xf32, #tpu.memory_space<vmem>>, vector<16x32xf32>,
    } else {
    }
    return
  }
  func.func @transform_0(%arg0: i32, %arg1: i32) -> (i32, i32) {
    %c0_i32 = arith.constant 0 : i32
    %c0_i32_0 = arith.constant 0 : i32
    return %arg0, %c0_i32 : i32, i32
  }
  func.func @transform_1(%arg0: i32, %arg1: i32) -> (i32, i32) {
    %c0_i32 = arith.constant 0 : i32
    %c0_i32_0 = arith.constant 0 : i32
    return %c0_i32, %arg1 : i32, i32
  }
  func.func @transform_2(%arg0: i32, %arg1: i32) -> (i32, i32) {
    %c0_i32 = arith.constant 0 : i32
    %c0_i32_0 = arith.constant 0 : i32
    return %arg1, %c0_i32 : i32, i32
  }
  func.func @transform_3(%arg0: i32, %arg1: i32) -> (i32, i32) {
    %c0_i32 = arith.constant 0 : i32
    %c0_i32_0 = arith.constant 0 : i32
    return %arg0, %c0_i32 : i32, i32
  }
}

</mosaic_0001>

<bundles_post_ra>
// kernel: tpu_custom_call.1
= control target key start
LH: loop header
LB: loop body
LE: loop exit
PB: predicated region body
PF: predicated region fallthrough
CT: control target
= control target key end

     0   :  { %vm19_vm0 = vcmask 261120   ;;  %s456_s0 = inlined_call_operand.vmem [shape: f32[16,32], index: 0, kind: input, shape index: {}]   ;;  %s457_s1 = inlined_call_operand.vmem [shape: f32[32,64], index: 1, kind: input, shape index: {}]   ;;  %s458_s2 = inlined_call_operand.vmem [shape: f32[64,32], index: 2, kind: input, shape index: {}]   ;;  %s459_s3 = inlined_call_operand.hbm [shape: f32[16,32], index: 3, kind: output, shape index: {}]  }
   0x1   :  { %v24_v0 = vld [vmem:[%s457_s1] sm:$0xff]  ;;  %v25_v1 = vld [vmem:[%s457_s1 + $0x8] sm:$0xff]  ;;  %v26_v2 = vld [vmem:[%s457_s1 + $0x10] sm:$0xff] }
   0x2   :  { %v310_v3 = vpack.c.bf16 %v25_v1, %v24_v0  ;;  %v27_v4 = vld [vmem:[%s457_s1 + $0x18] sm:$0xff]  ;;  %v22_v5 = vld [vmem:[%s456_s0] sm:$0xff]  ;;  %v115_v8 = vld [vmem:[%s458_s2 + $0x8] sm:$0xff] }
   0x3   :  { %v314_v6 = vpack.c.bf16 %v27_v4, %v26_v2  ;;  %288 = vmatprep.mubr.msk.f32.mxu0 %vm19_vm0, %v22_v5  ;;  %v114_v7 = vld [vmem:[%s458_s2] sm:$0xff]  ;;  %v116_v9 = vld [vmem:[%s458_s2 + $0x10] sm:$0xff]  ;;  %v117_v11 = vld [vmem:[%s458_s2 + $0x18] sm:$0xff] }
   0x4   :  { %311 = vmatprep.subr.bf16.mxu0 %v310_v3  ;;  %v318_v10 = vpack.c.bf16 %v115_v8, %v114_v7  ;;  %v322_v12 = vpack.c.bf16 %v117_v11, %v116_v9  ;;  %v118_v13 = vld [vmem:[%s458_s2 + $0x20] sm:$0xff]  ;;  %v119_v14 = vld [vmem:[%s458_s2 + $0x28] sm:$0xff] }
   0x5   :  { %313 = vmatpush3.bf16.msra.mxu0 %v310_v3 }
   0x6   :  { %8 = vsyncpa [#allocation4], 0  ;;  %315 = vmatprep.subr.bf16.mxu0 %v314_v6  ;;  %319 = vmatprep.subr.bf16.mxu1 %v318_v10  ;;  %v326_v15 = vpack.c.bf16 %v119_v14, %v118_v13  ;;  %v23_v16 = vld [vmem:[%s456_s0 + $0x8] sm:$0xff]  ;;  %v120_v17 = vld [vmem:[%s458_s2 + $0x30] sm:$0xff]  ;;  %v366_v20 = vmov 0.0   ;;  %vm122_vm1 = vcmask 523264  }
   0x7   :  { %321 = vmatpush3.bf16.msra.mxu1 %v318_v10  ;;  %v121_v18 = vld [vmem:[%s458_s2 + $0x38] sm:$0xff]  ;;  %21 = vst.msk [vmem:[#allocation2 + $0x8] sm:$0xff] %vm19_vm0, %v366_v20  ;;  %20 = vst.msk [vmem:[#allocation2] sm:$0xff] %vm19_vm0, %v366_v20  ;;  %s367_s0 = smov [#allocation3]  }
   0x8   :  { %323 = vmatprep.subr.bf16.mxu1 %v322_v12  ;;  %v330_v19 = vpack.c.bf16 %v121_v18, %v120_v17  ;;  %s249_s2 = sshll.u32 %s367_s0, 4  ;;  %s250_s2 = int_to_ptr.vmem [resolvable:$true] %s249_s2 }
   0x9   :  { %317 = vmatpush3.bf16.msra.mxu0 %v314_v6  ;;  %s342_s12 = scalar_lea.vmem %s250_s2, 256  ;;  %p347_p1 = scmp.lt.s32.totalorder %s250_s2, %s250_s2 }
   0xa   :  { %p343_p0 = scmp.ne.s32.totalorder %s250_s2, %s342_s12  ;;  %p348_p2 = scmp.lt.s32.totalorder %s342_s12, %s342_s12 }
   0xb   :  { %325 = vmatpush3.bf16.msra.mxu1 %v322_v12 }
   0xc   :  { %289 = vmatmul.mubr.msk.f32.vlgmr.msra.gmra.mrb[0].mxu0 %vm19_vm0, %v23_v16  ;;  %327 = vmatprep.subr.bf16.mxu1 %v326_v15  ;;  %p349_p3 = por %p348_p2, %p347_p1 }
   0xe   :  { %v113_v25 = vld [vmem:[#allocation2 + $0x8] sm:$0xff]  ;;  %v112_v26 = vld [vmem:[#allocation2] sm:$0xff]  ;;  %p350_p4 = pnand %p349_p3, %p343_p0 }
   0xf   :  { %329 = vmatpush3.bf16.msra.mxu1 %v326_v15 }
  0x10   :  { %331 = vmatprep.subr.bf16.mxu1 %v330_v19 }
  0x13   :  { %333 = vmatpush3.bf16.msra.mxu1 %v330_v19 }
  0xdf   :  { %v290_v21 = vpop.f32.mrb[0].mxu0 }
  0xe0   :  { %v101_v22 = vpop.f32.mrb[1].mxu0  ;;  %v111_v24 = vmax.f32 %v290_v21, 0.0 }
  0xe1   :  { %v110_v23 = vmax.f32 %v101_v22, 0.0 }
  0xe3   :  { %307 = vmatprep.mubr.msk.f32.mxu1 %vm122_vm1, %v110_v23 }
  0xe4   :  { %308 = vmatmul.mubr.msk.f32.vlgmr.msra.gmra.mrb[0].mxu1 %vm122_vm1, %v111_v24 }
 0x1b7   :  { %v309_v27 = vpop.f32.mrb[0].mxu1 }
 0x1b8   :  { %v205_v28 = vadd.f32 %v309_v27, %v113_v25  ;;  %v195_v29 = vpop.f32.mrb[1].mxu1 }
 0x1b9   :  { %v204_v30 = vadd.f32 %v195_v29, %v112_v26 }
 0x1ba   :  { %207 = vst.msk [vmem:[#allocation2 + $0x8] sm:$0xff] %vm19_vm0, %v205_v28 }
 0x1bb   :  { %206 = vst.msk [vmem:[#allocation2] sm:$0xff] %vm19_vm0, %v204_v30 }
 0x1c1   :  { %v212_v32 = vld [vmem:[#allocation2 + $0x8] sm:$0xff] }
 0x1c2   :  { %v211_v31 = vld [vmem:[#allocation2] sm:$0xff]  ;;  %v214_v35 = vadd.f32 %v212_v32, %v23_v16 }
 0x1c3   :  { %v213_v33 = vadd.f32 %v211_v31, %v22_v5 }
 0x1c4   :  { %v218_v36 = vsel %vm19_vm0, %v214_v35, 0.0 }
 0x1c5   :  { %v215_v34 = vsel %vm19_vm0, %v213_v33, 0.0 }
 0x1c6   :  { %216 = vadd.xlane.f32.xlu0 %v215_v34 }
 0x1ca   :  { %219 = vadd.xlane.f32.xlu0 %v218_v36 }
 0x253   :  { %v217_v37 = vpop.xlane.xlu0 %216 }
 0x254   :  { %v222_v38 = vmul.f32 0.03125, %v217_v37 }
 0x256   :  { %v224_v39 = vsub.f32 %v213_v33, %v222_v38 }
 0x257   :  { %v220_v40 = vpop.xlane.xlu0 %219 }
 0x258   :  { %v223_v41 = vmul.f32 0.03125, %v220_v40  ;;  %v226_v42 = vmul.f32 %v224_v39, %v224_v39 }
 0x25a   :  { %v225_v43 = vsub.f32 %v214_v35, %v223_v41  ;;  %v228_v44 = vsel %vm19_vm0, %v226_v42, 0.0 }
 0x25b   :  { %229 = vadd.xlane.f32.xlu1 %v228_v44 }
 0x25c   :  { %v227_v45 = vmul.f32 %v225_v43, %v225_v43 }
 0x25e   :  { %v231_v46 = vsel %vm19_vm0, %v227_v45, 0.0 }
 0x25f   :  { %232 = vadd.xlane.f32.xlu1 %v231_v46 }
 0x2e8   :  { %v230_v47 = vpop.xlane.xlu1 %229 }
 0x2e9   :  { %v234_v48 = vmul.f32 0.03125, %v230_v47 }
 0x2eb   :  { %v236_v49 = vadd.f32 1e-05, %v234_v48 }
 0x2ec   :  { %v233_v50 = vpop.xlane.xlu1 %232 }
 0x2ed   :  { %338 = vrsqrt.f32 %v236_v49  ;;  %v235_v51 = vmul.f32 0.03125, %v233_v50 }
 0x2ef   :  { %v237_v52 = vadd.f32 1e-05, %v235_v51 }
 0x2f1   :  { %340 = vrsqrt.f32 %v237_v52 }
 0x2f7   :  { %v339_v53 = vpop.eup %338 }
 0x2f8   :  { %v240_v54 = vmul.f32 %v339_v53, %v224_v39 }
 0x2fa   :  { %242 = vst.msk [vmem:[#allocation3] sm:$0xff] %vm19_vm0, %v240_v54 }
 0x2fb   :  { %v341_v55 = vpop.eup %340 }
 0x2fc   :  { %v241_v56 = vmul.f32 %v341_v55, %v225_v43 }
 0x2fe   :  { %243 = vst.msk [vmem:[#allocation3 + $0x8] sm:$0xff] %vm19_vm0, %v241_v56 }
 0x2ff   :  { %353 = shalt.err (!%p350_p4)
}
 0x300   :  { %s354_s15 = scalar_lea.hbm %s459_s3, 256 }
 0x301   :  { %p355_p5 = scmp.ne.s32.totalorder %s459_s3, %s354_s15  ;;  %p358_p6 = scmp.lt.u32.totalorder %s354_s15, %s459_s3 }
 0x303   :  { %p360_p7 = pnand %p358_p6, %p355_p5 }
 0x305   :  { %363 = shalt.err (!%p360_p7)
}
 0x306   :  { %s368_s20 = smov 128   ;;  %s369_s21 = smov 8  }
 0x307   :  { %255 = dma.vmem_to_hbm [thread:$0]  %s250_s2, 256, %s459_s3, [#allocation4], %s368_s20, %s368_s20, %s369_s21  }
 0x308   :  { %364 = dma.done.wait [#allocation4], 256  }
 0x309   :  { %365 = vsyncadd [#allocation4], 4294967040 }
 0x30a   :  { %259 = vsyncpa [#allocation4], 1 }

</bundles_post_ra>
